<compile_context>
chip_gen: v5e
topology: v5e:2x2
jax: 0.10.0
libtpu: 0.0.40
codegen_flags: <defaults>
</compile_context>

<pallas_src>
import functools

import jax
import jax.numpy as jnp
from jax.experimental import pallas as pl
from jax.experimental.pallas import tpu as pltpu

EPS = 1e-5
H1, H2 = 64, 32          # hidden widths fixed by the module spec
MAX_TILE_B = 2048        # batch tile (rows) for the pipelined grid
LANE = 128


def _round_up(x, m):
    return (x + m - 1) // m * m


def _vmem_limit():
    """Generation-aware scoped-VMEM limit (v7x has 64 MiB/TC, v5e/v6e 128 MiB)."""
    try:
        cap = int(0.75 * pltpu.get_tpu_info().vmem_capacity_bytes)
    except Exception:  # pragma: no cover - conservative fallback
        cap = 32 << 20
    return max(16 << 20, min(cap, 64 << 20))


def _x_spec(tile_b, d_model, n_tiles):
    """x input spec; deeper buffering only when the grid is deep enough."""
    idx = lambda i: (i, 0)
    if n_tiles >= 3:
        try:
            return pl.BlockSpec((tile_b, d_model), idx,
                                pipeline_mode=pl.Buffered(3))
        except TypeError:
            pass
    return pl.BlockSpec((tile_b, d_model), idx)


def _full_spec(shape):
    """Whole-array block (weights / packed vectors), resident across the grid."""
    return pl.BlockSpec(shape, lambda i, _s=shape: (0,) * len(_s))


def _mxu_sums(h):
    """sum(h, 0) and sum(h*h, 0) as (1,B)@(B,F) matmuls -> stats ride the MXU."""
    ones = jnp.ones((1, h.shape[0]), jnp.float32)
    s = jnp.dot(ones, h, preferred_element_type=jnp.float32)
    ss = jnp.dot(ones, h * h, preferred_element_type=jnp.float32)
    return s, ss


# --------------------------------------------------------------------------
# Kernels
# --------------------------------------------------------------------------
def _stats1_kernel(x_ref, w1_ref, s_ref):
    # Linear1 without bias (cancelled exactly by BN mean subtraction).
    h1 = jnp.dot(x_ref[...], w1_ref[...], preferred_element_type=jnp.float32)
    # Zero-padded batch rows give h1 == 0 exactly (no bias), so no mask needed.
    s, ss = _mxu_sums(h1)
    s_ref[...] = jnp.concatenate([s, ss], axis=0)[None]      # (1, 2, H1)


def _stats2_kernel(x_ref, w1_ref, w2_ref, aff1_ref, s_ref, *, batch):
    i = pl.program_id(0)
    tb = x_ref.shape[0]
    h1 = jnp.dot(x_ref[...], w1_ref[...], preferred_element_type=jnp.float32)
    a1 = jnp.maximum(h1 * aff1_ref[0:1, :] + aff1_ref[1:2, :], 0.0)
    h2 = jnp.dot(a1, w2_ref[...], preferred_element_type=jnp.float32)
    # Mask zero-padded batch rows out of the BN2 statistics.
    rows = jax.lax.broadcasted_iota(jnp.int32, h2.shape, 0) + i * tb
    h2 = jnp.where(rows < batch, h2, 0.0)
    s, ss = _mxu_sums(h2)
    s_ref[...] = jnp.concatenate([s, ss], axis=0)[None]      # (1, 2, H2)


def _apply_kernel(x_ref, w1_ref, w2_ref, w3_ref, aff_ref, o_ref):
    # aff rows: [scale1, shift1, scale2, shift2, b3(padded)]
    h1 = jnp.dot(x_ref[...], w1_ref[...], preferred_element_type=jnp.float32)
    a1 = jnp.maximum(h1 * aff_ref[0:1, :H1] + aff_ref[1:2, :H1], 0.0)
    h2 = jnp.dot(a1, w2_ref[...], preferred_element_type=jnp.float32)
    a2 = jnp.maximum(h2 * aff_ref[2:3, :H2] + aff_ref[3:4, :H2], 0.0)
    out = jnp.dot(a2, w3_ref[...], preferred_element_type=jnp.float32)
    out = out + aff_ref[4:5, :]
    o_ref[...] = out.astype(o_ref.dtype)                     # lane-dense store


# --------------------------------------------------------------------------
# Wrapper
# --------------------------------------------------------------------------
def classifier_head(x, params):
    """x: (B, d_model) float32. params: see init_params. Returns (B, num_classes)."""
    B, d_model = x.shape
    num_classes = params["w3"].shape[1]
    ncp = _round_up(max(num_classes, LANE), LANE)   # lane-dense output width

    tile_b = min(MAX_TILE_B, _round_up(B, 8))
    pb = _round_up(B, tile_b)
    if pb != B:
        x = jnp.pad(x, ((0, pb - B), (0, 0)))       # zero rows, masked from stats
    n_tiles = pb // tile_b

    w1 = params["w1"].astype(jnp.float32)
    w2 = params["w2"].astype(jnp.float32)
    w3p = jnp.zeros((H2, ncp), jnp.float32).at[:, :num_classes].set(params["w3"])

    cp = pltpu.CompilerParams(dimension_semantics=("parallel",),
                              vmem_limit_bytes=_vmem_limit())
    x_spec = _x_spec(tile_b, d_model, n_tiles)

    # ---- Pass 1: BN1 statistics (per-tile partial sums, combined in JAX) ----
    part1 = pl.pallas_call(
        _stats1_kernel,
        grid=(n_tiles,),
        in_specs=[x_spec, _full_spec((d_model, H1))],
        out_specs=pl.BlockSpec((1, 2, H1), lambda i: (i, 0, 0)),
        out_shape=jax.ShapeDtypeStruct((n_tiles, 2, H1), jnp.float32),
        compiler_params=cp,
    )(x, w1)
    sums1 = jnp.sum(part1, axis=0)                            # (2, H1)
    mu1 = sums1[0] / B
    var1 = jnp.maximum(sums1[1] / B - mu1 * mu1, 0.0)         # clamp fp cancellation
    scale1 = params["g1"].reshape(-1) * jax.lax.rsqrt(var1 + EPS)
    shift1 = params["be1"].reshape(-1) - mu1 * scale1
    aff1 = jnp.stack([scale1, shift1], axis=0)                # (2, H1)

    # ---- Pass 2: BN2 statistics ----
    part2 = pl.pallas_call(
        functools.partial(_stats2_kernel, batch=B),
        grid=(n_tiles,),
        in_specs=[x_spec, _full_spec((d_model, H1)), _full_spec((H1, H2)),
                  _full_spec((2, H1))],
        out_specs=pl.BlockSpec((1, 2, H2), lambda i: (i, 0, 0)),
        out_shape=jax.ShapeDtypeStruct((n_tiles, 2, H2), jnp.float32),
        compiler_params=cp,
    )(x, w1, w2, aff1)
    sums2 = jnp.sum(part2, axis=0)
    mu2 = sums2[0] / B
    var2 = jnp.maximum(sums2[1] / B - mu2 * mu2, 0.0)
    scale2 = params["g2"].reshape(-1) * jax.lax.rsqrt(var2 + EPS)
    shift2 = params["be2"].reshape(-1) - mu2 * scale2

    # Packed per-feature vectors (one DMA descriptor for all small vectors).
    aff = jnp.zeros((5, ncp), jnp.float32)
    aff = aff.at[0, :H1].set(scale1)
    aff = aff.at[1, :H1].set(shift1)
    aff = aff.at[2, :H2].set(scale2)
    aff = aff.at[3, :H2].set(shift2)
    aff = aff.at[4, :num_classes].set(params["b3"].reshape(-1))

    # ---- Pass 3: fused apply, lane-dense padded output ----
    outp = pl.pallas_call(
        _apply_kernel,
        grid=(n_tiles,),
        in_specs=[x_spec, _full_spec((d_model, H1)), _full_spec((H1, H2)),
                  _full_spec((H2, ncp)), _full_spec((5, ncp))],
        out_specs=pl.BlockSpec((tile_b, ncp), lambda i: (i, 0)),
        out_shape=jax.ShapeDtypeStruct((pb, ncp), x.dtype),
        compiler_params=cp,
    )(x, w1, w2, w3p, aff)

    return outp[:B, :num_classes]


# --------------------------------------------------------------------------
# Params / reference / test
# --------------------------------------------------------------------------
def init_params(key, d_model=128, num_classes=10):
    """Deterministic synthetic init (uniform like PyTorch Linear default)."""
    dims = [d_model, H1, H2, num_classes]
    ks = jax.random.split(key, 6)
    params = {}
    for i in range(3):
        fan_in, fan_out = dims[i], dims[i + 1]
        bound = 1.0 / (fan_in ** 0.5)
        # stored as (in, out) => x @ W + b  (== PyTorch x @ W.T + b)
        params[f"w{i+1}"] = jax.random.uniform(
            ks[2 * i], (fan_in, fan_out), jnp.float32, -bound, bound)
        params[f"b{i+1}"] = jax.random.uniform(
            ks[2 * i + 1], (1, fan_out), jnp.float32, -bound, bound)
    # BatchNorm affine params (PyTorch init: gamma=1, beta=0)
    params["g1"] = jnp.ones((1, H1), jnp.float32)
    params["be1"] = jnp.zeros((1, H1), jnp.float32)
    params["g2"] = jnp.ones((1, H2), jnp.float32)
    params["be2"] = jnp.zeros((1, H2), jnp.float32)
    return params


def reference(x, params):
    """Pure-JAX reference with exact PyTorch module semantics (incl. b1/b2)."""
    h = x @ params["w1"] + params["b1"]
    mu = h.mean(0, keepdims=True)
    var = ((h - mu) ** 2).mean(0, keepdims=True)
    h = jnp.maximum((h - mu) / jnp.sqrt(var + EPS) * params["g1"] + params["be1"], 0.0)
    h = h @ params["w2"] + params["b2"]
    mu = h.mean(0, keepdims=True)
    var = ((h - mu) ** 2).mean(0, keepdims=True)
    h = jnp.maximum((h - mu) / jnp.sqrt(var + EPS) * params["g2"] + params["be2"], 0.0)
    return h @ params["w3"] + params["b3"]


if __name__ == "__main__":
    B, D_MODEL, NUM_CLASSES = 8, 128, 10
    key = jax.random.PRNGKey(0)
    kx, kp = jax.random.split(key)
    x = jax.random.normal(kx, (B, D_MODEL), jnp.float32)
    params = init_params(kp, d_model=D_MODEL, num_classes=NUM_CLASSES)

    out = jax.jit(classifier_head)(x, params)
    out = jax.block_until_ready(out)

    ref = reference(x, params)
    assert out.shape == (B, NUM_CLASSES)
    # b1/b2 dropped in-kernel (cancelled exactly by BN mean subtraction in real
    # arithmetic); only fp rounding differs from the PyTorch-exact reference.
    assert jnp.allclose(out, ref, atol=2e-4, rtol=2e-4), "mismatch vs reference"
    print("KERNEL_OK")
</pallas_src>

<mosaic_0001>
module attributes {stable_mosaic.version = 11 : i64} {
  func.func @_stats1_kernel(%arg0: i32, %arg1: memref<8x128xf32, #tpu.memory_space<vmem>>, %arg2: memref<128x64xf32, #tpu.memory_space<vmem>>, %arg3: memref<1x2x64xf32, #tpu.memory_space<vmem>>) attributes {dimension_semantics = [#tpu.dimension_semantics<parallel>], iteration_bounds = array<i64: 1>, scalar_prefetch = 0 : i64, scratch_operands = 0 : i64, tpu.core_type = #tpu.core_type<tc>, window_params = [{transform_indices = @transform_0, window_bounds = array<i64: 8, 128>}, {pipeline_mode = #tpu.pipeline_mode<synchronous>, transform_indices = @transform_1, window_bounds = array<i64: 128, 64>}, {transform_indices = @transform_2, window_bounds = array<i64: 1, 2, 64>}]} {
    %c0 = arith.constant 0 : index
    %c0_0 = arith.constant 0 : index
    %0 = vector.load %arg1[%c0, %c0_0] : memref<8x128xf32, #tpu.memory_space<vmem>>, vector<8x128xf32>
    %c0_1 = arith.constant 0 : index
    %c0_2 = arith.constant 0 : index
    %1 = vector.load %arg2[%c0_1, %c0_2] : memref<128x64xf32, #tpu.memory_space<vmem>>, vector<128x64xf32>
    %cst = arith.constant dense<0.000000e+00> : vector<8x64xf32>
    %2 = tpu.matmul %0, %1, %cst {dimension_numbers = #tpu.dot_dimension_numbers<[1], [0], [0], [1], [0, 0, 1, 1], [], []>} : vector<8x128xf32>, vector<128x64xf32>, vector<8x64xf32> -> vector<8x64xf32>
    %cst_3 = arith.constant 1.000000e+00 : f32
    %3 = vector.broadcast %cst_3 : f32 to vector<1x8xf32>
    %cst_4 = arith.constant dense<0.000000e+00> : vector<1x64xf32>
    %4 = tpu.matmul %3, %2, %cst_4 {dimension_numbers = #tpu.dot_dimension_numbers<[1], [0], [0], [1], [0, 0, 1, 1], [], []>} : vector<1x8xf32>, vector<8x64xf32>, vector<1x64xf32> -> vector<1x64xf32>
    %5 = arith.mulf %2, %2 : vector<8x64xf32>
    %cst_5 = arith.constant dense<0.000000e+00> : vector<1x64xf32>
    %6 = tpu.matmul %3, %5, %cst_5 {dimension_numbers = #tpu.dot_dimension_numbers<[1], [0], [0], [1], [0, 0, 1, 1], [], []>} : vector<1x8xf32>, vector<8x64xf32>, vector<1x64xf32> -> vector<1x64xf32>
    %7 = tpu.concatenate %4, %6 in 0 : vector<1x64xf32>, vector<1x64xf32> -> vector<2x64xf32>
    %8 = vector.shape_cast %7 : vector<2x64xf32> to vector<1x2x64xf32>
    %c0_6 = arith.constant 0 : index
    %c0_7 = arith.constant 0 : index
    %c0_8 = arith.constant 0 : index
    %9 = vector.load %arg3[%c0_6, %c0_7, %c0_8] : memref<1x2x64xf32, #tpu.memory_space<vmem>>, vector<1x2x64xf32>
    tpu.vector_store %arg3[%c0_6, %c0_7, %c0_8], %8 {strides = array<i32>} : memref<1x2x64xf32, #tpu.memory_space<vmem>>, vector<1x2x64xf32>,
    return
  }
  func.func @transform_0(%arg0: i32) -> (i32, i32) {
    %c0_i32 = arith.constant 0 : i32
    %c0_i32_0 = arith.constant 0 : i32
    return %arg0, %c0_i32 : i32, i32
  }
  func.func @transform_1(%arg0: i32) -> (i32, i32) {
    %c0_i32 = arith.constant 0 : i32
    %c0_i32_0 = arith.constant 0 : i32
    %c0_i32_1 = arith.constant 0 : i32
    return %c0_i32, %c0_i32_0 : i32, i32
  }
  func.func @transform_2(%arg0: i32) -> (i32, i32, i32) {
    %c0_i32 = arith.constant 0 : i32
    %c0_i32_0 = arith.constant 0 : i32
    %c0_i32_1 = arith.constant 0 : i32
    return %arg0, %c0_i32, %c0_i32_0 : i32, i32, i32
  }
}

module attributes {stable_mosaic.version = 11 : i64} {
  func.func @_stats2_kernel(%arg0: i32, %arg1: memref<8x128xf32, #tpu.memory_space<vmem>>, %arg2: memref<128x64xf32, #tpu.memory_space<vmem>>, %arg3: memref<64x32xf32, #tpu.memory_space<vmem>>, %arg4: memref<2x64xf32, #tpu.memory_space<vmem>>, %arg5: memref<1x2x32xf32, #tpu.memory_space<vmem>>) attributes {dimension_semantics = [#tpu.dimension_semantics<parallel>], iteration_bounds = array<i64: 1>, scalar_prefetch = 0 : i64, scratch_operands = 0 : i64, tpu.core_type = #tpu.core_type<tc>, window_params = [{transform_indices = @transform_0, window_bounds = array<i64: 8, 128>}, {pipeline_mode = #tpu.pipeline_mode<synchronous>, transform_indices = @transform_1, window_bounds = array<i64: 128, 64>}, {pipeline_mode = #tpu.pipeline_mode<synchronous>, transform_indices = @transform_2, window_bounds = array<i64: 64, 32>}, {pipeline_mode = #tpu.pipeline_mode<synchronous>, transform_indices = @transform_3, window_bounds = array<i64: 2, 64>}, {transform_indices = @transform_4, window_bounds = array<i64: 1, 2, 32>}]} {
    %c0 = arith.constant 0 : index
    %c0_0 = arith.constant 0 : index
    %0 = vector.load %arg1[%c0, %c0_0] : memref<8x128xf32, #tpu.memory_space<vmem>>, vector<8x128xf32>
    %c0_1 = arith.constant 0 : index
    %c0_2 = arith.constant 0 : index
    %1 = vector.load %arg2[%c0_1, %c0_2] : memref<128x64xf32, #tpu.memory_space<vmem>>, vector<128x64xf32>
    %cst = arith.constant dense<0.000000e+00> : vector<8x64xf32>
    %2 = tpu.matmul %0, %1, %cst {dimension_numbers = #tpu.dot_dimension_numbers<[1], [0], [0], [1], [0, 0, 1, 1], [], []>} : vector<8x128xf32>, vector<128x64xf32>, vector<8x64xf32> -> vector<8x64xf32>
    %c0_3 = arith.constant 0 : index
    %c0_4 = arith.constant 0 : index
    %3 = vector.load %arg4[%c0_3, %c0_4] : memref<2x64xf32, #tpu.memory_space<vmem>>, vector<1x64xf32>
    %4 = vector.broadcast %3 : vector<1x64xf32> to vector<8x64xf32>
    %5 = arith.mulf %2, %4 : vector<8x64xf32>
    %c1 = arith.constant 1 : index
    %c0_5 = arith.constant 0 : index
    %6 = vector.load %arg4[%c1, %c0_5] : memref<2x64xf32, #tpu.memory_space<vmem>>, vector<1x64xf32>
    %7 = vector.broadcast %6 : vector<1x64xf32> to vector<8x64xf32>
    %8 = arith.addf %5, %7 : vector<8x64xf32>
    %cst_6 = arith.constant 0.000000e+00 : f32
    %9 = vector.broadcast %cst_6 : f32 to vector<8x64xf32>
    %10 = arith.maximumf %8, %9 : vector<8x64xf32>
    %c0_7 = arith.constant 0 : index
    %c0_8 = arith.constant 0 : index
    %11 = vector.load %arg3[%c0_7, %c0_8] : memref<64x32xf32, #tpu.memory_space<vmem>>, vector<64x32xf32>
    %cst_9 = arith.constant dense<0.000000e+00> : vector<8x32xf32>
    %12 = tpu.matmul %10, %11, %cst_9 {dimension_numbers = #tpu.dot_dimension_numbers<[1], [0], [0], [1], [0, 0, 1, 1], [], []>} : vector<8x64xf32>, vector<64x32xf32>, vector<8x32xf32> -> vector<8x32xf32>
    %13 = tpu.iota {dimensions = array<i32: 0>} : vector<8x32xi32>
    %c8_i32 = arith.constant 8 : i32
    %14 = arith.muli %arg0, %c8_i32 : i32
    %15 = vector.broadcast %14 : i32 to vector<8x32xi32>
    %16 = arith.addi %13, %15 : vector<8x32xi32>
    %c8_i32_10 = arith.constant 8 : i32
    %17 = vector.broadcast %c8_i32_10 : i32 to vector<8x32xi32>
    %18 = arith.cmpi slt, %16, %17 : vector<8x32xi32>
    %cst_11 = arith.constant 0.000000e+00 : f32
    %19 = vector.broadcast %cst_11 : f32 to vector<8x32xf32>
    %20 = arith.select %18, %12, %19 : vector<8x32xi1>, vector<8x32xf32>
    %cst_12 = arith.constant 1.000000e+00 : f32
    %21 = vector.broadcast %cst_12 : f32 to vector<1x8xf32>
    %cst_13 = arith.constant dense<0.000000e+00> : vector<1x32xf32>
    %22 = tpu.matmul %21, %20, %cst_13 {dimension_numbers = #tpu.dot_dimension_numbers<[1], [0], [0], [1], [0, 0, 1, 1], [], []>} : vector<1x8xf32>, vector<8x32xf32>, vector<1x32xf32> -> vector<1x32xf32>
    %23 = arith.mulf %20, %20 : vector<8x32xf32>
    %cst_14 = arith.constant dense<0.000000e+00> : vector<1x32xf32>
    %24 = tpu.matmul %21, %23, %cst_14 {dimension_numbers = #tpu.dot_dimension_numbers<[1], [0], [0], [1], [0, 0, 1, 1], [], []>} : vector<1x8xf32>, vector<8x32xf32>, vector<1x32xf32> -> vector<1x32xf32>
    %25 = tpu.concatenate %22, %24 in 0 : vector<1x32xf32>, vector<1x32xf32> -> vector<2x32xf32>
    %26 = vector.shape_cast %25 : vector<2x32xf32> to vector<1x2x32xf32>
    %c0_15 = arith.constant 0 : index
    %c0_16 = arith.constant 0 : index
    %c0_17 = arith.constant 0 : index
    %27 = vector.load %arg5[%c0_15, %c0_16, %c0_17] : memref<1x2x32xf32, #tpu.memory_space<vmem>>, vector<1x2x32xf32>
    tpu.vector_store %arg5[%c0_15, %c0_16, %c0_17], %26 {strides = array<i32>} : memref<1x2x32xf32, #tpu.memory_space<vmem>>, vector<1x2x32xf32>,
    return
  }
  func.func @transform_0(%arg0: i32) -> (i32, i32) {
    %c0_i32 = arith.constant 0 : i32
    %c0_i32_0 = arith.constant 0 : i32
    return %arg0, %c0_i32 : i32, i32
  }
  func.func @transform_1(%arg0: i32) -> (i32, i32) {
    %c0_i32 = arith.constant 0 : i32
    %c0_i32_0 = arith.constant 0 : i32
    %c0_i32_1 = arith.constant 0 : i32
    return %c0_i32, %c0_i32_0 : i32, i32
  }
  func.func @transform_2(%arg0: i32) -> (i32, i32) {
    %c0_i32 = arith.constant 0 : i32
    %c0_i32_0 = arith.constant 0 : i32
    %c0_i32_1 = arith.constant 0 : i32
    return %c0_i32, %c0_i32_0 : i32, i32
  }
  func.func @transform_3(%arg0: i32) -> (i32, i32) {
    %c0_i32 = arith.constant 0 : i32
    %c0_i32_0 = arith.constant 0 : i32
    %c0_i32_1 = arith.constant 0 : i32
    return %c0_i32, %c0_i32_0 : i32, i32
  }
  func.func @transform_4(%arg0: i32) -> (i32, i32, i32) {
    %c0_i32 = arith.constant 0 : i32
    %c0_i32_0 = arith.constant 0 : i32
    %c0_i32_1 = arith.constant 0 : i32
    return %arg0, %c0_i32, %c0_i32_0 : i32, i32, i32
  }
}

module attributes {stable_mosaic.version = 11 : i64} {
  func.func @_apply_kernel(%arg0: i32, %arg1: memref<8x128xf32, #tpu.memory_space<vmem>>, %arg2: memref<128x64xf32, #tpu.memory_space<vmem>>, %arg3: memref<64x32xf32, #tpu.memory_space<vmem>>, %arg4: memref<32x128xf32, #tpu.memory_space<vmem>>, %arg5: memref<5x128xf32, #tpu.memory_space<vmem>>, %arg6: memref<8x128xf32, #tpu.memory_space<vmem>>) attributes {dimension_semantics = [#tpu.dimension_semantics<parallel>], iteration_bounds = array<i64: 1>, scalar_prefetch = 0 : i64, scratch_operands = 0 : i64, tpu.core_type = #tpu.core_type<tc>, window_params = [{transform_indices = @transform_0, window_bounds = array<i64: 8, 128>}, {pipeline_mode = #tpu.pipeline_mode<synchronous>, transform_indices = @transform_1, window_bounds = array<i64: 128, 64>}, {pipeline_mode = #tpu.pipeline_mode<synchronous>, transform_indices = @transform_2, window_bounds = array<i64: 64, 32>}, {pipeline_mode = #tpu.pipeline_mode<synchronous>, transform_indices = @transform_3, window_bounds = array<i64: 32, 128>}, {pipeline_mode = #tpu.pipeline_mode<synchronous>, transform_indices = @transform_4, window_bounds = array<i64: 5, 128>}, {transform_indices = @transform_5, window_bounds = array<i64: 8, 128>}]} {
    %c0 = arith.constant 0 : index
    %c0_0 = arith.constant 0 : index
    %0 = vector.load %arg1[%c0, %c0_0] : memref<8x128xf32, #tpu.memory_space<vmem>>, vector<8x128xf32>
    %c0_1 = arith.constant 0 : index
    %c0_2 = arith.constant 0 : index
    %1 = vector.load %arg2[%c0_1, %c0_2] : memref<128x64xf32, #tpu.memory_space<vmem>>, vector<128x64xf32>
    %cst = arith.constant dense<0.000000e+00> : vector<8x64xf32>
    %2 = tpu.matmul %0, %1, %cst {dimension_numbers = #tpu.dot_dimension_numbers<[1], [0], [0], [1], [0, 0, 1, 1], [], []>} : vector<8x128xf32>, vector<128x64xf32>, vector<8x64xf32> -> vector<8x64xf32>
    %c0_3 = arith.constant 0 : index
    %c0_4 = arith.constant 0 : index
    %3 = vector.load %arg5[%c0_3, %c0_4] : memref<5x128xf32, #tpu.memory_space<vmem>>, vector<1x64xf32>
    %4 = vector.broadcast %3 : vector<1x64xf32> to vector<8x64xf32>
    %5 = arith.mulf %2, %4 : vector<8x64xf32>
    %c1 = arith.constant 1 : index
    %c0_5 = arith.constant 0 : index
    %6 = vector.load %arg5[%c1, %c0_5] : memref<5x128xf32, #tpu.memory_space<vmem>>, vector<1x64xf32>
    %7 = vector.broadcast %6 : vector<1x64xf32> to vector<8x64xf32>
    %8 = arith.addf %5, %7 : vector<8x64xf32>
    %cst_6 = arith.constant 0.000000e+00 : f32
    %9 = vector.broadcast %cst_6 : f32 to vector<8x64xf32>
    %10 = arith.maximumf %8, %9 : vector<8x64xf32>
    %c0_7 = arith.constant 0 : index
    %c0_8 = arith.constant 0 : index
    %11 = vector.load %arg3[%c0_7, %c0_8] : memref<64x32xf32, #tpu.memory_space<vmem>>, vector<64x32xf32>
    %cst_9 = arith.constant dense<0.000000e+00> : vector<8x32xf32>
    %12 = tpu.matmul %10, %11, %cst_9 {dimension_numbers = #tpu.dot_dimension_numbers<[1], [0], [0], [1], [0, 0, 1, 1], [], []>} : vector<8x64xf32>, vector<64x32xf32>, vector<8x32xf32> -> vector<8x32xf32>
    %c2 = arith.constant 2 : index
    %c0_10 = arith.constant 0 : index
    %13 = vector.load %arg5[%c2, %c0_10] : memref<5x128xf32, #tpu.memory_space<vmem>>, vector<1x32xf32>
    %14 = vector.broadcast %13 : vector<1x32xf32> to vector<8x32xf32>
    %15 = arith.mulf %12, %14 : vector<8x32xf32>
    %c3 = arith.constant 3 : index
    %c0_11 = arith.constant 0 : index
    %16 = vector.load %arg5[%c3, %c0_11] : memref<5x128xf32, #tpu.memory_space<vmem>>, vector<1x32xf32>
    %17 = vector.broadcast %16 : vector<1x32xf32> to vector<8x32xf32>
    %18 = arith.addf %15, %17 : vector<8x32xf32>
    %cst_12 = arith.constant 0.000000e+00 : f32
    %19 = vector.broadcast %cst_12 : f32 to vector<8x32xf32>
    %20 = arith.maximumf %18, %19 : vector<8x32xf32>
    %c0_13 = arith.constant 0 : index
    %c0_14 = arith.constant 0 : index
    %21 = vector.load %arg4[%c0_13, %c0_14] : memref<32x128xf32, #tpu.memory_space<vmem>>, vector<32x128xf32>
    %cst_15 = arith.constant dense<0.000000e+00> : vector<8x128xf32>
    %22 = tpu.matmul %20, %21, %cst_15 {dimension_numbers = #tpu.dot_dimension_numbers<[1], [0], [0], [1], [0, 0, 1, 1], [], []>} : vector<8x32xf32>, vector<32x128xf32>, vector<8x128xf32> -> vector<8x128xf32>
    %c4 = arith.constant 4 : index
    %c0_16 = arith.constant 0 : index
    %23 = vector.load %arg5[%c4, %c0_16] : memref<5x128xf32, #tpu.memory_space<vmem>>, vector<1x128xf32>
    %24 = vector.broadcast %23 : vector<1x128xf32> to vector<8x128xf32>
    %25 = arith.addf %22, %24 : vector<8x128xf32>
    %c0_17 = arith.constant 0 : index
    %c0_18 = arith.constant 0 : index
    %26 = vector.load %arg6[%c0_17, %c0_18] : memref<8x128xf32, #tpu.memory_space<vmem>>, vector<8x128xf32>
    tpu.vector_store %arg6[%c0_17, %c0_18], %25 {strides = array<i32>} : memref<8x128xf32, #tpu.memory_space<vmem>>, vector<8x128xf32>,
    return
  }
  func.func @transform_0(%arg0: i32) -> (i32, i32) {
    %c0_i32 = arith.constant 0 : i32
    %c0_i32_0 = arith.constant 0 : i32
    return %arg0, %c0_i32 : i32, i32
  }
  func.func @transform_1(%arg0: i32) -> (i32, i32) {
    %c0_i32 = arith.constant 0 : i32
    %c0_i32_0 = arith.constant 0 : i32
    %c0_i32_1 = arith.constant 0 : i32
    return %c0_i32, %c0_i32_0 : i32, i32
  }
  func.func @transform_2(%arg0: i32) -> (i32, i32) {
    %c0_i32 = arith.constant 0 : i32
    %c0_i32_0 = arith.constant 0 : i32
    %c0_i32_1 = arith.constant 0 : i32
    return %c0_i32, %c0_i32_0 : i32, i32
  }
  func.func @transform_3(%arg0: i32) -> (i32, i32) {
    %c0_i32 = arith.constant 0 : i32
    %c0_i32_0 = arith.constant 0 : i32
    %c0_i32_1 = arith.constant 0 : i32
    return %c0_i32, %c0_i32_0 : i32, i32
  }
  func.func @transform_4(%arg0: i32) -> (i32, i32) {
    %c0_i32 = arith.constant 0 : i32
    %c0_i32_0 = arith.constant 0 : i32
    %c0_i32_1 = arith.constant 0 : i32
    return %c0_i32, %c0_i32_0 : i32, i32
  }
  func.func @transform_5(%arg0: i32) -> (i32, i32) {
    %c0_i32 = arith.constant 0 : i32
    %c0_i32_0 = arith.constant 0 : i32
    return %arg0, %c0_i32 : i32, i32
  }
}

</mosaic_0001>

<bundles_post_ra>
// kernel: classifier_head.3
= control target key start
LH: loop header
LB: loop body
LE: loop exit
PB: predicated region body
PF: predicated region fallthrough
CT: control target
= control target key end

     0   :  { %vm48_vm0 = vcmask 64512   ;;  %v107_v19 = vmov 1.0   ;;  %vm96_vm1 = vcmask 1040384   ;;  %vm98_vm2 = vcmask 517120   ;;  %s177_s1 = inlined_call_operand.vmem [shape: f32[128,64], index: 1, kind: input, shape index: {}]   ;;  %s178_s0 = inlined_call_operand.vmem [shape: f32[8,128], index: 0, kind: input, shape index: {}]   ;;  %s179_s2 = inlined_call_operand.vmem [shape: f32[1,2,64], index: 2, kind: output, shape index: {}]  }
   0x1   :  { %v27_v0 = vld [vmem:[%s177_s1 + $0x78] sm:$0xff]  ;;  %v26_v1 = vld [vmem:[%s177_s1 + $0x70] sm:$0xff]  ;;  %v25_v2 = vld [vmem:[%s177_s1 + $0x68] sm:$0xff] }
   0x2   :  { %28 = vmatpush.msra.mxu0 %v27_v0  ;;  %v24_v3 = vld [vmem:[%s177_s1 + $0x60] sm:$0xff]  ;;  %v23_v4 = vld [vmem:[%s177_s1 + $0x58] sm:$0xff]  ;;  %v22_v5 = vld [vmem:[%s177_s1 + $0x50] sm:$0xff] }
   0x3   :  { %v21_v6 = vld [vmem:[%s177_s1 + $0x48] sm:$0xff]  ;;  %v20_v7 = vld [vmem:[%s177_s1 + $0x40] sm:$0xff]  ;;  %v19_v8 = vld [vmem:[%s177_s1 + $0x38] sm:$0xff] }
   0x4   :  { %29 = vmatpush.msra.mxu0 %v26_v1  ;;  %v18_v9 = vld [vmem:[%s177_s1 + $0x30] sm:$0xff]  ;;  %v17_v10 = vld [vmem:[%s177_s1 + $0x28] sm:$0xff]  ;;  %v16_v11 = vld [vmem:[%s177_s1 + $0x20] sm:$0xff] }
   0x5   :  { %v15_v12 = vld [vmem:[%s177_s1 + $0x18] sm:$0xff]  ;;  %v14_v13 = vld [vmem:[%s177_s1 + $0x10] sm:$0xff]  ;;  %v13_v14 = vld [vmem:[%s177_s1 + $0x8] sm:$0xff] }
   0x6   :  { %30 = vmatpush.msra.mxu0 %v25_v2  ;;  %v12_v15 = vld [vmem:[%s177_s1] sm:$0xff] }
   0x7   :  { %v11_v16 = vld [vmem:[%s178_s0] sm:$0xff] }
   0x8   :  { %31 = vmatpush.msra.mxu0 %v24_v3 }
   0xa   :  { %32 = vmatpush.msra.mxu0 %v23_v4 }
   0xc   :  { %33 = vmatpush.msra.mxu0 %v22_v5 }
   0xe   :  { %34 = vmatpush.msra.mxu0 %v21_v6 }
  0x10   :  { %35 = vmatpush.msra.mxu0 %v20_v7 }
  0x12   :  { %36 = vmatpush.msra.mxu0 %v19_v8 }
  0x14   :  { %37 = vmatpush.msra.mxu0 %v18_v9 }
  0x16   :  { %38 = vmatpush.msra.mxu0 %v17_v10 }
  0x18   :  { %39 = vmatpush.msra.mxu0 %v16_v11 }
  0x1a   :  { %40 = vmatpush.msra.mxu0 %v15_v12 }
  0x1c   :  { %41 = vmatpush.msra.mxu0 %v14_v13 }
  0x1e   :  { %42 = vmatpush.msra.mxu0 %v13_v14 }
  0x20   :  { %43 = vmatpush.msra.mxu0 %v12_v15 }
  0x21   :  { %44 = vmatmul.f32.vlgmr.msra.gmra.mxu0 %v11_v16 }
  0x9e   :  { %v45_v17 = vpop.f32.mrf.mxu0 }
  0x9f   :  { %67 = vmatpush.msra.mxu1 %v45_v17  ;;  %v72_v18 = vmul.f32 %v45_v17, %v45_v17 }
  0xa0   :  { %104 = vmatmul.msk.f32.vlgmr.msra.gmra.mxu1 %vm48_vm0, %v107_v19 }
  0xa1   :  { %88 = vmatpush.msra.mxu2 %v72_v18 }
  0xa2   :  { %105 = vmatmul.msk.f32.vlgmr.msra.gmra.mxu2 %vm48_vm0, %v107_v19 }
 0x11d   :  { %v69_v21 = vpop.f32.mrf.mxu1 }
 0x125   :  { %v90_v20 = vpop.f32.mrf.mxu2 }
 0x126   :  { %v94_v22 = vrot.slane %v90_v20, 7 }
 0x128   :  { %v97_v23 = vsel %vm96_vm1, %v69_v21, %v94_v22 }
 0x129   :  { %99 = vst.msk [vmem:[%s179_s2] sm:$0x3] %vm98_vm2, %v97_v23 }

// kernel: classifier_head.4
= control target key start
LH: loop header
LB: loop body
LE: loop exit
PB: predicated region body
PF: predicated region fallthrough
CT: control target
= control target key end

     0   :  { %vm69_vm0 = vcmask 523264   ;;  %vm100_vm1 = vcmask 64512   ;;  %v162_v33 = vmov 1.0   ;;  %vm148_vm2 = vcmask 1040384   ;;  %s272_s1 = inlined_call_operand.vmem [shape: f32[128,64], index: 1, kind: input, shape index: {}]   ;;  %s273_s2 = inlined_call_operand.vmem [shape: f32[64,32], index: 2, kind: input, shape index: {}]   ;;  %s274_s3 = inlined_call_operand.vmem [shape: f32[2,64], index: 3, kind: input, shape index: {}]   ;;  %s275_s0 = inlined_call_operand.vmem [shape: f32[8,128], index: 0, kind: input, shape index: {}]   ;;  %s276_s4 = inlined_call_operand.vmem [shape: f32[1,2,32], index: 4, kind: output, shape index: {}]  }
   0x1   :  { %v33_v0 = vld [vmem:[%s272_s1 + $0x78] sm:$0xff]  ;;  %v32_v1 = vld [vmem:[%s272_s1 + $0x70] sm:$0xff]  ;;  %v31_v2 = vld [vmem:[%s272_s1 + $0x68] sm:$0xff]  ;;  %vm150_vm3 = vcmask 254976  }
   0x2   :  { %34 = vmatpush.msra.mxu0 %v33_v0  ;;  %v30_v3 = vld [vmem:[%s272_s1 + $0x60] sm:$0xff]  ;;  %v68_v4 = vld [vmem:[%s273_s2 + $0x38] sm:$0xff]  ;;  %v67_v6 = vld [vmem:[%s273_s2 + $0x30] sm:$0xff] }
   0x3   :  { %v29_v5 = vld [vmem:[%s272_s1 + $0x58] sm:$0xff]  ;;  %81 = vmatpush.msra.mxu1 %v68_v4  ;;  %v66_v7 = vld [vmem:[%s273_s2 + $0x28] sm:$0xff]  ;;  %v28_v8 = vld [vmem:[%s272_s1 + $0x50] sm:$0xff] }
   0x4   :  { %35 = vmatpush.msra.mxu0 %v32_v1  ;;  %v65_v9 = vld [vmem:[%s273_s2 + $0x20] sm:$0xff]  ;;  %v27_v10 = vld [vmem:[%s272_s1 + $0x48] sm:$0xff]  ;;  %v25_v12 = vld [vmem:[%s272_s1 + $0x38] sm:$0xff] }
   0x5   :  { %82 = vmatpush.msra.mxu1 %v67_v6  ;;  %v26_v11 = vld [vmem:[%s272_s1 + $0x40] sm:$0xff]  ;;  %v24_v13 = vld [vmem:[%s272_s1 + $0x30] sm:$0xff]  ;;  %v23_v14 = vld [vmem:[%s272_s1 + $0x28] sm:$0xff] }
   0x6   :  { %36 = vmatpush.msra.mxu0 %v31_v2  ;;  %v22_v15 = vld [vmem:[%s272_s1 + $0x20] sm:$0xff]  ;;  %v21_v16 = vld [vmem:[%s272_s1 + $0x18] sm:$0xff]  ;;  %v20_v17 = vld [vmem:[%s272_s1 + $0x10] sm:$0xff] }
   0x7   :  { %83 = vmatpush.msra.mxu1 %v66_v7  ;;  %v19_v18 = vld [vmem:[%s272_s1 + $0x8] sm:$0xff]  ;;  %v18_v19 = vld [vmem:[%s272_s1] sm:$0xff]  ;;  %v64_v21 = vld [vmem:[%s273_s2 + $0x18] sm:$0xff] }
   0x8   :  { %37 = vmatpush.msra.mxu0 %v30_v3  ;;  %v17_v20 = vld [vmem:[%s275_s0] sm:$0xff]  ;;  %v63_v22 = vld [vmem:[%s273_s2 + $0x10] sm:$0xff]  ;;  %v62_v23 = vld [vmem:[%s273_s2 + $0x8] sm:$0xff] }
   0x9   :  { %84 = vmatpush.msra.mxu1 %v65_v9  ;;  %v61_v24 = vld [vmem:[%s273_s2] sm:$0xff] }
   0xa   :  { %38 = vmatpush.msra.mxu0 %v29_v5  ;;  %v160_v25 = vld [vmem:[%s274_s3] ss:$0 sm:$0xff]  ;;  %v161_v26 = vld [vmem:[%s274_s3 + $0x1] ss:$0 sm:$0xff] }
   0xb   :  { %85 = vmatpush.msra.mxu1 %v64_v21 }
   0xc   :  { %39 = vmatpush.msra.mxu0 %v28_v8 }
   0xd   :  { %86 = vmatpush.msra.mxu1 %v63_v22 }
   0xe   :  { %40 = vmatpush.msra.mxu0 %v27_v10 }
   0xf   :  { %87 = vmatpush.msra.mxu1 %v62_v23 }
  0x10   :  { %41 = vmatpush.msra.mxu0 %v26_v11 }
  0x11   :  { %88 = vmatpush.msra.mxu1 %v61_v24 }
  0x12   :  { %42 = vmatpush.msra.mxu0 %v25_v12 }
  0x14   :  { %43 = vmatpush.msra.mxu0 %v24_v13 }
  0x16   :  { %44 = vmatpush.msra.mxu0 %v23_v14 }
  0x18   :  { %45 = vmatpush.msra.mxu0 %v22_v15 }
  0x1a   :  { %46 = vmatpush.msra.mxu0 %v21_v16 }
  0x1c   :  { %47 = vmatpush.msra.mxu0 %v20_v17 }
  0x1e   :  { %48 = vmatpush.msra.mxu0 %v19_v18 }
  0x20   :  { %49 = vmatpush.msra.mxu0 %v18_v19 }
  0x21   :  { %50 = vmatmul.f32.vlgmr.msra.gmra.mxu0 %v17_v20 }
  0x9e   :  { %v51_v27 = vpop.f32.mrf.mxu0 }
  0x9f   :  { %v56_v28 = vmul.f32 %v160_v25, %v51_v27 }
  0xa1   :  { %v59_v29 = vadd.f32 %v161_v26, %v56_v28 }
  0xa3   :  { %v60_v30 = vmax.f32 %v59_v29, 0.0 }
  0xa5   :  { %156 = vmatmul.msk.f32.vlgmr.msra.gmra.mxu1 %vm69_vm0, %v60_v30 }
 0x122   :  { %v90_v31 = vpop.f32.mrf.mxu1 }
 0x123   :  { %119 = vmatpush.msra.mxu2 %v90_v31  ;;  %v124_v32 = vmul.f32 %v90_v31, %v90_v31 }
 0x124   :  { %157 = vmatmul.msk.f32.vlgmr.msra.gmra.mxu2 %vm100_vm1, %v162_v33 }
 0x125   :  { %140 = vmatpush.msra.mxu3 %v124_v32 }
 0x126   :  { %158 = vmatmul.msk.f32.vlgmr.msra.gmra.mxu3 %vm100_vm1, %v162_v33 }
 0x1a7   :  { %v121_v35 = vpop.f32.mrf.mxu2 }
 0x1a9   :  { %v142_v34 = vpop.f32.mrf.mxu3 }
 0x1aa   :  { %v146_v36 = vrot.slane %v142_v34, 7 }
 0x1ac   :  { %v149_v37 = vsel %vm148_vm2, %v121_v35, %v146_v36 }
 0x1ad   :  { %151 = vst.msk [vmem:[%s276_s4] sm:$0x3] %vm150_vm3, %v149_v37 }

// kernel: classifier_head.5
= control target key start
LH: loop header
LB: loop body
LE: loop exit
PB: predicated region body
PF: predicated region fallthrough
CT: control target
= control target key end

     0   :  { %s321_s0 = inlined_call_operand.vmem [shape: f32[8,128], index: 0, kind: input, shape index: {}]   ;;  %s322_s1 = inlined_call_operand.vmem [shape: f32[128,64], index: 1, kind: input, shape index: {}]   ;;  %s323_s2 = inlined_call_operand.vmem [shape: f32[64,32], index: 2, kind: input, shape index: {}]   ;;  %s324_s3 = inlined_call_operand.vmem [shape: f32[32,128], index: 3, kind: input, shape index: {}]   ;;  %s325_s4 = inlined_call_operand.vmem [shape: f32[5,128], index: 4, kind: input, shape index: {}]   ;;  %s326_s5 = inlined_call_operand.hbm [shape: f32[8,128], index: 5, kind: output, shape index: {}]  }
   0x1   :  { %v37_v0 = vld [vmem:[%s322_s1 + $0x78] sm:$0xff]  ;;  %v36_v1 = vld [vmem:[%s322_s1 + $0x70] sm:$0xff]  ;;  %v35_v2 = vld [vmem:[%s322_s1 + $0x68] sm:$0xff] }
   0x2   :  { %38 = vmatpush.msra.mxu0 %v37_v0  ;;  %v34_v3 = vld [vmem:[%s322_s1 + $0x60] sm:$0xff]  ;;  %v33_v4 = vld [vmem:[%s322_s1 + $0x58] sm:$0xff]  ;;  %v32_v6 = vld [vmem:[%s322_s1 + $0x50] sm:$0xff] }
   0x3   :  { %v72_v5 = vld [vmem:[%s323_s2 + $0x38] sm:$0xff]  ;;  %v71_v7 = vld [vmem:[%s323_s2 + $0x30] sm:$0xff]  ;;  %v70_v8 = vld [vmem:[%s323_s2 + $0x28] sm:$0xff] }
   0x4   :  { %39 = vmatpush.msra.mxu0 %v36_v1  ;;  %85 = vmatpush.msra.mxu1 %v72_v5 }
   0x6   :  { %40 = vmatpush.msra.mxu0 %v35_v2  ;;  %86 = vmatpush.msra.mxu1 %v71_v7 }
   0x8   :  { %41 = vmatpush.msra.mxu0 %v34_v3 }
   0x9   :  { %10 = vsyncpa [#allocation3], 0  ;;  %v69_v9 = vld [vmem:[%s323_s2 + $0x20] sm:$0xff]  ;;  %v31_v10 = vld [vmem:[%s322_s1 + $0x48] sm:$0xff]  ;;  %87 = vmatpush.msra.mxu1 %v70_v8  ;;  %vm73_vm0 = vcmask 523264   ;;  %vm110_vm1 = vcmask 261120  }
   0xa   :  { %42 = vmatpush.msra.mxu0 %v33_v4  ;;  %v30_v11 = vld [vmem:[%s322_s1 + $0x40] sm:$0xff]  ;;  %v29_v12 = vld [vmem:[%s322_s1 + $0x38] sm:$0xff]  ;;  %v28_v13 = vld [vmem:[%s322_s1 + $0x30] sm:$0xff]  ;;  %s142_s11 = sshll.u32 %s326_s5, 4  ;;  %s143_s11 = int_to_ptr.hbm [resolvable:$true] %s142_s11 }
   0xb   :  { %88 = vmatpush.msra.mxu1 %v69_v9  ;;  %v27_v14 = vld [vmem:[%s322_s1 + $0x28] sm:$0xff]  ;;  %v26_v15 = vld [vmem:[%s322_s1 + $0x20] sm:$0xff]  ;;  %v25_v16 = vld [vmem:[%s322_s1 + $0x18] sm:$0xff] }
   0xc   :  { %43 = vmatpush.msra.mxu0 %v32_v6  ;;  %v24_v17 = vld [vmem:[%s322_s1 + $0x10] sm:$0xff]  ;;  %v23_v18 = vld [vmem:[%s322_s1 + $0x8] sm:$0xff]  ;;  %v22_v19 = vld [vmem:[%s322_s1] sm:$0xff] }
   0xd   :  { %v21_v20 = vld [vmem:[%s321_s0] sm:$0xff]  ;;  %v68_v21 = vld [vmem:[%s323_s2 + $0x18] sm:$0xff]  ;;  %v67_v22 = vld [vmem:[%s323_s2 + $0x10] sm:$0xff] }
   0xe   :  { %44 = vmatpush.msra.mxu0 %v31_v10  ;;  %89 = vmatpush.msra.mxu1 %v68_v21  ;;  %v66_v23 = vld [vmem:[%s323_s2 + $0x8] sm:$0xff]  ;;  %v65_v24 = vld [vmem:[%s323_s2] sm:$0xff]  ;;  %v107_v31 = vld [vmem:[%s324_s3 + $0x18] sm:$0xff] }
   0xf   :  { %v154_v25 = vld [vmem:[%s325_s4] ss:$0 sm:$0xff]  ;;  %v155_v26 = vld [vmem:[%s325_s4 + $0x1] ss:$0 sm:$0xff]  ;;  %126 = vmatpush.msra.mxu2 %v107_v31  ;;  %v106_v32 = vld [vmem:[%s324_s3 + $0x10] sm:$0xff] }
  0x10   :  { %45 = vmatpush.msra.mxu0 %v30_v11  ;;  %90 = vmatpush.msra.mxu1 %v67_v22  ;;  %v105_v33 = vld [vmem:[%s324_s3 + $0x8] sm:$0xff]  ;;  %v104_v34 = vld [vmem:[%s324_s3] sm:$0xff]  ;;  %s185_s3 = smov [#allocation2]  }
  0x11   :  { %127 = vmatpush.msra.mxu2 %v106_v32  ;;  %v156_v35 = vld [vmem:[%s325_s4 + $0x2] ss:$0 sm:$0xff]  ;;  %v157_v36 = vld [vmem:[%s325_s4 + $0x3] ss:$0 sm:$0xff]  ;;  %v158_v41 = vld [vmem:[%s325_s4 + $0x4] ss:$0 sm:$0xff] }
  0x12   :  { %46 = vmatpush.msra.mxu0 %v29_v12  ;;  %91 = vmatpush.msra.mxu1 %v66_v23  ;;  %s140_s8 = sshll.u32 %s185_s3, 4  ;;  %s141_s8 = int_to_ptr.vmem [resolvable:$true] %s140_s8 }
  0x13   :  { %128 = vmatpush.msra.mxu2 %v105_v33 }
  0x14   :  { %47 = vmatpush.msra.mxu0 %v28_v13  ;;  %92 = vmatpush.msra.mxu1 %v65_v24 }
  0x15   :  { %129 = vmatpush.msra.mxu2 %v104_v34 }
  0x16   :  { %48 = vmatpush.msra.mxu0 %v27_v14 }
  0x18   :  { %49 = vmatpush.msra.mxu0 %v26_v15 }
  0x1a   :  { %50 = vmatpush.msra.mxu0 %v25_v16 }
  0x1c   :  { %51 = vmatpush.msra.mxu0 %v24_v17 }
  0x1e   :  { %52 = vmatpush.msra.mxu0 %v23_v18 }
  0x20   :  { %53 = vmatpush.msra.mxu0 %v22_v19 }
  0x21   :  { %54 = vmatmul.f32.vlgmr.msra.gmra.mxu0 %v21_v20 }
  0x9e   :  { %v55_v27 = vpop.f32.mrf.mxu0 }
  0x9f   :  { %v60_v28 = vmul.f32 %v154_v25, %v55_v27 }
  0xa1   :  { %v63_v29 = vadd.f32 %v155_v26, %v60_v28 }
  0xa3   :  { %v64_v30 = vmax.f32 %v63_v29, 0.0 }
  0xa5   :  { %151 = vmatmul.msk.f32.vlgmr.msra.gmra.mxu1 %vm73_vm0, %v64_v30 }
 0x122   :  { %v94_v37 = vpop.f32.mrf.mxu1 }
 0x123   :  { %v99_v38 = vmul.f32 %v156_v35, %v94_v37 }
 0x125   :  { %v102_v39 = vadd.f32 %v157_v36, %v99_v38 }
 0x127   :  { %v103_v40 = vmax.f32 %v102_v39, 0.0 }
 0x129   :  { %152 = vmatmul.msk.f32.vlgmr.msra.gmra.mxu2 %vm110_vm1, %v103_v40 }
 0x1ac   :  { %v131_v42 = vpop.f32.mrf.mxu2 }
 0x1ad   :  { %v132_v43 = vadd.f32 %v158_v41, %v131_v42 }
 0x1af   :  { %134 = vst [vmem:[#allocation2] sm:$0xff] %v132_v43 }
 0x1b0   :  { %145 = dma.vmem_to_hbm [thread:$0]  %s141_s8, 128, %s143_s11, [#allocation3]  }
 0x1b1   :  { %183 = dma.done.wait [#allocation3], 128  }
 0x1b2   :  { %184 = vsyncadd [#allocation3], 4294967168 }
 0x1b3   :  { %150 = vsyncpa [#allocation3], 1 }

</bundles_post_ra>
